<compile_context>
chip_gen: v7x
topology: tpu7x:2x2x1
jax: 0.10.0
libtpu: 0.0.40
codegen_flags: <defaults>
</compile_context>

<pallas_src>
import functools

import jax
import jax.numpy as jnp
from jax import lax
from jax.experimental import pallas as pl
from jax.experimental.pallas import tpu as pltpu


# ---------------------------------------------------------------------------
# Helpers
# ---------------------------------------------------------------------------
def _round_up(x, m):
    return (x + m - 1) // m * m


def _vmem_cap_bytes():
    """Physical VMEM per TensorCore; conservative fallback = v7x's 64 MiB."""
    try:
        info = pltpu.get_tpu_info()
        cap = int(getattr(info, "vmem_capacity_bytes", 0))
        if cap > 0:
            return cap
    except Exception:
        pass
    return 64 * 1024 * 1024


def _choose_tiles(tm, Kp, Vp, xb, wb, ob, budget):
    """Pick (tn, tk, split_k). Prefer full-K tiles (no reduction axis)."""
    # Full-K: one MXU dot per (i, j) tile, no accumulator, widest lane-dense tn.
    for tn in (1024, 768, 512, 384, 256, 128):
        tn = min(tn, Vp)
        if Vp % tn:
            continue
        need = 2 * (tm * Kp * xb + tn * Kp * wb + tm * tn * ob)  # double-buffered
        if need <= budget:
            return tn, Kp, False
    # Fallback: split K, keep a resident f32 accumulator.
    for tn in (512, 256, 128):
        tn = min(tn, Vp)
        if Vp % tn:
            continue
        for tk in (2048, 1024, 512, 256, 128):
            tk = min(tk, Kp)
            if Kp % tk:
                continue
            need = 2 * (tm * tk * xb + tn * tk * wb + tm * tn * ob) + tm * tn * 4
            if need <= budget:
                return tn, tk, True
    return min(128, Vp), min(128, Kp), True


# ---------------------------------------------------------------------------
# Kernels
# ---------------------------------------------------------------------------
def _head_matmul_fullk_kernel(x_ref, w_ref, o_ref):
    """One (tm, tn) output tile = x_tile @ w_tile.T in a single MXU dot.

    x_ref: (tm, K), w_ref: (tn, K) -> contract last dim of both (no transpose).
    """
    o_ref[...] = lax.dot_general(
        x_ref[...],
        w_ref[...],
        dimension_numbers=(((1,), (1,)), ((), ())),
        preferred_element_type=jnp.float32,
    ).astype(o_ref.dtype)


def _head_matmul_ksplit_kernel(x_ref, w_ref, o_ref, acc_ref):
    """Fallback for very large K: accumulate over the K grid axis in f32."""
    k = pl.program_id(3)

    @pl.when(k == 0)
    def _():
        acc_ref[...] = jnp.zeros_like(acc_ref)

    acc_ref[...] += lax.dot_general(
        x_ref[...],
        w_ref[...],
        dimension_numbers=(((1,), (1,)), ((), ())),
        preferred_element_type=jnp.float32,
    )

    @pl.when(k == pl.num_programs(3) - 1)
    def _():
        o_ref[...] = acc_ref[...].astype(o_ref.dtype)


# ---------------------------------------------------------------------------
# Wrapper: fused (optionally multi-shard) LM-head matmul
# ---------------------------------------------------------------------------
@functools.partial(jax.jit, static_argnames=("compute_dtype",))
def _tp_head_matmul(x, w_stacked, compute_dtype=None):
    """x: (M, K), w_stacked: (R, V_local, K)  ->  (M, R * V_local).

    Shard r's logits land in output columns [r*V_local, (r+1)*V_local): this is
    exactly the all-gather-then-concat result of TensorParallelHead.
    """
    M, K = x.shape
    R, Vl, K2 = w_stacked.shape
    assert K == K2, f"hidden dim mismatch: {K} vs {K2}"

    out_dtype = x.dtype
    if compute_dtype is not None:
        x = x.astype(compute_dtype)
        w_stacked = w_stacked.astype(compute_dtype)

    xb = jnp.dtype(x.dtype).itemsize
    wb = jnp.dtype(w_stacked.dtype).itemsize
    ob = jnp.dtype(out_dtype).itemsize

    cap = _vmem_cap_bytes()
    budget = int(0.45 * cap)  # double-buffered tile budget

    # --- pad to tile-friendly shapes ------------------------------------
    Kp = _round_up(K, 128)
    Vp = _round_up(Vl, 128)
    tm = min(128, _round_up(M, 16))
    Mp = _round_up(M, tm)

    tn, tk, split_k = _choose_tiles(tm, Kp, Vp, xb, wb, ob, budget)

    x_p = jnp.pad(x, ((0, Mp - M), (0, Kp - K))) if (Mp != M or Kp != K) else x
    if Vp != Vl or Kp != K:
        w_p = jnp.pad(w_stacked, ((0, 0), (0, Vp - Vl), (0, Kp - K)))
    else:
        w_p = w_stacked

    m_blocks = Mp // tm
    v_blocks = Vp // tn

    # VMEM: double-buffered inputs + outputs (+ accumulator if splitting K).
    need = 2 * (tm * tk * xb + tn * tk * wb + tm * tn * ob)
    if split_k:
        need += tm * tn * 4
    vmem_limit = int(min(0.9 * cap, max(2 * need, 32 * 1024 * 1024)))

    if not split_k:
        grid = (R, m_blocks, v_blocks)
        in_specs = [
            pl.BlockSpec((tm, Kp), lambda r, i, j: (i, 0)),          # x
            pl.BlockSpec((None, tn, Kp), lambda r, i, j: (r, j, 0)),  # weight shard
        ]
        out_spec = pl.BlockSpec((tm, tn), lambda r, i, j: (i, r * v_blocks + j))
        scratch = []
        kernel = _head_matmul_fullk_kernel
        dims = ("parallel", "parallel", "parallel")
    else:
        k_blocks = Kp // tk
        grid = (R, m_blocks, v_blocks, k_blocks)
        in_specs = [
            pl.BlockSpec((tm, tk), lambda r, i, j, k: (i, k)),           # x
            pl.BlockSpec((None, tn, tk), lambda r, i, j, k: (r, j, k)),  # weight
            # TODO(synk): sweep pipeline_mode=pl.Buffered(3) on the weight spec
            # once tiles are large and the weight DMA is the long pole.
        ]
        out_spec = pl.BlockSpec((tm, tn), lambda r, i, j, k: (i, r * v_blocks + j))
        scratch = [pltpu.VMEM((tm, tn), jnp.float32)]
        kernel = _head_matmul_ksplit_kernel
        dims = ("parallel", "parallel", "parallel", "arbitrary")

    out = pl.pallas_call(
        kernel,
        out_shape=jax.ShapeDtypeStruct((Mp, R * Vp), out_dtype),
        grid_spec=pltpu.PrefetchScalarGridSpec(
            num_scalar_prefetch=0,
            grid=grid,
            in_specs=in_specs,
            out_specs=out_spec,
            scratch_shapes=scratch,
        ),
        compiler_params=pltpu.CompilerParams(
            dimension_semantics=dims,
            vmem_limit_bytes=vmem_limit,
        ),
    )(x_p, w_p)

    out = out[:M]
    if Vp != Vl:
        # Strip per-shard vocab padding without an extra matmul pass.
        out = out.reshape(M, R, Vp)[:, :, :Vl].reshape(M, R * Vl)
    return out


# ---------------------------------------------------------------------------
# TensorParallelHead.forward
# ---------------------------------------------------------------------------
def tensor_parallel_head_forward(x, weight_shards, should_gather,
                                 compute_dtype=None):
    """Forward pass of TensorParallelHead (FastLinear, bias=None).

    weight_shards: list of per-rank weight shards, each (V_local, K).
      - should_gather=False: len == 1, returns x @ W.T              -> (..., V_local)
      - should_gather=True : emulated all_gather over the TP group,
        returns concat_r (x @ W_r.T) along the last dim             -> (..., V_local*world)
    """
    if not should_gather:
        (w,) = weight_shards
        w_stacked = w[None]                       # (1, V, K)
    else:
        # Fused emulation of the TP all_gather: single kernel writes every
        # shard's logits directly into its output slice (no concatenate).
        # TODO(synk): real multi-chip path -> pltpu.make_async_remote_copy +
        # pltpu.get_barrier_semaphore ring all-gather interleaved per j-step.
        w_stacked = jnp.stack(weight_shards, axis=0)  # (R, V_local, K)

    lead = x.shape[:-1]
    x2 = x.reshape(-1, x.shape[-1])
    out = _tp_head_matmul(x2, w_stacked, compute_dtype=compute_dtype)
    return out.reshape(*lead, out.shape[-1])


# ---------------------------------------------------------------------------
# Self-test
# ---------------------------------------------------------------------------
if __name__ == "__main__":
    key = jax.random.PRNGKey(0)
    kx, kw = jax.random.split(key)

    # Small, tile-friendly shapes: M tokens, K hidden, V vocab.
    M, K, V = 8, 256, 512
    world_size = 2
    dtype = jnp.float32

    x = jax.random.normal(kx, (M, K), dtype=dtype)
    w_full = jax.random.normal(kw, (V, K), dtype=dtype) * 0.05
    ref = x @ w_full.T

    # --- path 1: should_gather=False (world_size == 1) ---
    out_local = tensor_parallel_head_forward(x, [w_full], should_gather=False)
    out_local = jax.block_until_ready(out_local)
    assert out_local.shape == (M, V)
    assert jnp.allclose(out_local, ref, atol=1e-3, rtol=1e-3)

    # --- path 2: should_gather=True, emulated TP group of size 2 (fused) ---
    shards = [w_full[r * (V // world_size):(r + 1) * (V // world_size)]
              for r in range(world_size)]
    out_gather = tensor_parallel_head_forward(x, shards, should_gather=True)
    out_gather = jax.block_until_ready(out_gather)
    assert out_gather.shape == (M, V)
    assert jnp.allclose(out_gather, ref, atol=1e-3, rtol=1e-3)

    # --- path 3: decode-style ragged shapes exercise the padding path ---
    M3, V3 = 3, 320     # M not a multiple of 8, V not a multiple of 128
    x3 = jax.random.normal(kx, (M3, K), dtype=dtype)
    w3 = jax.random.normal(kw, (V3, K), dtype=dtype) * 0.05
    out3 = tensor_parallel_head_forward(x3, [w3], should_gather=False)
    out3 = jax.block_until_ready(out3)
    assert out3.shape == (M3, V3)
    assert jnp.allclose(out3, x3 @ w3.T, atol=1e-3, rtol=1e-3)

    print("KERNEL_OK")
</pallas_src>

<mosaic_0001>
module attributes {stable_mosaic.version = 11 : i64} {
  func.func @_head_matmul_fullk_kernel(%arg0: i32, %arg1: i32, %arg2: i32, %arg3: memref<16x256xf32, #tpu.memory_space<vmem>>, %arg4: memref<1x512x256xf32, #tpu.memory_space<vmem>>, %arg5: memref<16x512xf32, #tpu.memory_space<vmem>>) attributes {dimension_semantics = [#tpu.dimension_semantics<parallel>, #tpu.dimension_semantics<parallel>, #tpu.dimension_semantics<parallel>], iteration_bounds = array<i64: 1, 1, 1>, scalar_prefetch = 0 : i64, scratch_operands = 0 : i64, tpu.core_type = #tpu.core_type<tc>, window_params = [{transform_indices = @transform_0, window_bounds = array<i64: 16, 256>}, {transform_indices = @transform_1, window_bounds = array<i64: 1, 512, 256>}, {transform_indices = @transform_2, window_bounds = array<i64: 16, 512>}]} {
    %c0 = arith.constant 0 : index
    %c0_0 = arith.constant 0 : index
    %0 = vector.load %arg3[%c0, %c0_0] : memref<16x256xf32, #tpu.memory_space<vmem>>, vector<16x256xf32>
    %c0_1 = arith.constant 0 : index
    %c0_2 = arith.constant 0 : index
    %c0_3 = arith.constant 0 : index
    %1 = vector.load %arg4[%c0_1, %c0_2, %c0_3] : memref<1x512x256xf32, #tpu.memory_space<vmem>>, vector<1x512x256xf32>
    %2 = vector.shape_cast %1 : vector<1x512x256xf32> to vector<512x256xf32>
    %cst = arith.constant dense<0.000000e+00> : vector<16x512xf32>
    %3 = tpu.matmul %0, %2, %cst {dimension_numbers = #tpu.dot_dimension_numbers<[1], [1], [0], [0], [0, 0, 1, 0], [], []>} : vector<16x256xf32>, vector<512x256xf32>, vector<16x512xf32> -> vector<16x512xf32>
    %c0_4 = arith.constant 0 : index
    %c0_5 = arith.constant 0 : index
    %4 = vector.load %arg5[%c0_4, %c0_5] : memref<16x512xf32, #tpu.memory_space<vmem>>, vector<16x512xf32>
    tpu.vector_store %arg5[%c0_4, %c0_5], %3 {strides = array<i32>} : memref<16x512xf32, #tpu.memory_space<vmem>>, vector<16x512xf32>,
    return
  }
  func.func @transform_0(%arg0: i32, %arg1: i32, %arg2: i32) -> (i32, i32) {
    %c0_i32 = arith.constant 0 : i32
    %c0_i32_0 = arith.constant 0 : i32
    return %arg1, %c0_i32 : i32, i32
  }
  func.func @transform_1(%arg0: i32, %arg1: i32, %arg2: i32) -> (i32, i32, i32) {
    %c0_i32 = arith.constant 0 : i32
    %c0_i32_0 = arith.constant 0 : i32
    return %arg0, %arg2, %c0_i32 : i32, i32, i32
  }
  func.func @transform_2(%arg0: i32, %arg1: i32, %arg2: i32) -> (i32, i32) {
    %c1_i32 = arith.constant 1 : i32
    %0 = arith.muli %arg0, %c1_i32 : i32
    %1 = arith.addi %0, %arg2 : i32
    %c0_i32 = arith.constant 0 : i32
    return %arg1, %1 : i32, i32
  }
}

</mosaic_0001>

<bundles_post_ra>
// kernel: _tp_head_matmul.1
= control target key start
LH: loop header
LB: loop body
LE: loop exit
PB: predicated region body
PF: predicated region fallthrough
CT: control target
= control target key end

     0   :  { %7 = vsyncpa [#allocation3], 0  ;;  %s515_s9 = smov [#allocation2]   ;;  %s581_s0 = inlined_call_operand.vmem [shape: f32[16,256], index: 0, kind: input, shape index: {}]   ;;  %s582_s1 = inlined_call_operand.hbm [shape: f32[1,512,256], index: 1, kind: input, shape index: {}]   ;;  %s583_s2 = inlined_call_operand.vmem [shape: f32[16,512], index: 2, kind: output, shape index: {}]  }
   0x1   :  { %s15_s10 = sshll.u32 %s515_s9, 4  ;;  %s491_s13 = scalar_lea.hbm %s582_s1, 16384  ;;  %s16_s10 = int_to_ptr.vmem [resolvable:$true] %s15_s10 }
   0x2   :  { %p492_p0 = scmp.ne.s32.totalorder %s582_s1, %s491_s13  ;;  %p495_p1 = scmp.lt.u32.totalorder %s491_s13, %s582_s1 }
   0x4   :  { %p497_p2 = pnand %p495_p1, %p492_p0 }
   0x6   :  { %500 = shalt.err (!%p497_p2)
}
   0x7   :  { %s501_s18 = scalar_lea.vmem %s16_s10, 16384  ;;  %p506_p4 = scmp.lt.s32.totalorder %s16_s10, %s16_s10 }
   0x8   :  { %p502_p3 = scmp.ne.s32.totalorder %s16_s10, %s501_s18  ;;  %p507_p5 = scmp.lt.s32.totalorder %s501_s18, %s501_s18 }
   0xa   :  { %p508_p6 = por %p507_p5, %p506_p4 }
   0xc   :  { %p509_p7 = pnand %p508_p6, %p502_p3 }
   0xe   :  { %512 = shalt.err (!%p509_p7)
}
   0xf   :  { %s516_s19 = smov 256   ;;  %s517_s20 = smov 16  }
  0x10   :  { %21 = dma.hbm_to_vmem [thread:$0]  %s582_s1, 16384, %s16_s10, [#allocation3], %s516_s19, %s516_s19, %s517_s20  }
  0x11   :  { %513 = dma.done.wait [#allocation3], 16384  }
  0x12   :  { %514 = vsyncadd [#allocation3], 4294950912  ;;  %v44_v0 = vld [vmem:[#allocation2 + $0x8] sm:$0xff]  ;;  %v46_v1 = vld [vmem:[#allocation2 + $0x18] sm:$0xff] }
  0x13   :  { %v108_v2 = vld [vmem:[#allocation2 + $0x208] sm:$0xff]  ;;  %v360_v3 = vpack.c.bf16 %v46_v1, %v44_v0  ;;  %v110_v4 = vld [vmem:[#allocation2 + $0x218] sm:$0xff]  ;;  %v43_v5 = vld [vmem:[#allocation2] sm:$0xff] }
  0x14   :  { %v45_v6 = vld [vmem:[#allocation2 + $0x10] sm:$0xff]  ;;  %v424_v7 = vpack.c.bf16 %v110_v4, %v108_v2  ;;  %v107_v9 = vld [vmem:[#allocation2 + $0x200] sm:$0xff]  ;;  %v48_v11 = vld [vmem:[#allocation2 + $0x28] sm:$0xff] }
  0x15   :  { %v362_v8 = vpack.c.bf16 %v45_v6, %v43_v5  ;;  %v109_v10 = vld [vmem:[#allocation2 + $0x210] sm:$0xff]  ;;  %361 = vmatprep.subr.bf16.mxu0 %v360_v3  ;;  %v50_v13 = vld [vmem:[#allocation2 + $0x38] sm:$0xff]  ;;  %v112_v14 = vld [vmem:[#allocation2 + $0x228] sm:$0xff] }
  0x16   :  { %v426_v12 = vpack.c.bf16 %v109_v10, %v107_v9  ;;  %v114_v15 = vld [vmem:[#allocation2 + $0x238] sm:$0xff]  ;;  %425 = vmatprep.subr.bf16.mxu1 %v424_v7  ;;  %v364_v16 = vpack.c.bf16 %v50_v13, %v48_v11  ;;  %v47_v18 = vld [vmem:[#allocation2 + $0x20] sm:$0xff]  ;;  %v49_v19 = vld [vmem:[#allocation2 + $0x30] sm:$0xff] }
  0x17   :  { %363 = vmatpush1.bf16.xpose.msra.mxu0 %v362_v8  ;;  %v428_v17 = vpack.c.bf16 %v114_v15, %v112_v14  ;;  %v111_v20 = vld [vmem:[#allocation2 + $0x220] sm:$0xff]  ;;  %v113_v21 = vld [vmem:[#allocation2 + $0x230] sm:$0xff]  ;;  %v52_v22 = vld [vmem:[#allocation2 + $0x48] sm:$0xff]  ;;  %v366_v26 = vpack.c.bf16 %v49_v19, %v47_v18 }
  0x18   :  { %427 = vmatpush1.bf16.xpose.msra.mxu1 %v426_v12  ;;  %365 = vmatprep.subr.bf16.mxu0 %v364_v16  ;;  %v54_v23 = vld [vmem:[#allocation2 + $0x58] sm:$0xff]  ;;  %v116_v24 = vld [vmem:[#allocation2 + $0x248] sm:$0xff]  ;;  %v430_v27 = vpack.c.bf16 %v113_v21, %v111_v20  ;;  %v51_v30 = vld [vmem:[#allocation2 + $0x40] sm:$0xff] }
  0x19   :  { %429 = vmatprep.subr.bf16.mxu1 %v428_v17  ;;  %v118_v25 = vld [vmem:[#allocation2 + $0x258] sm:$0xff]  ;;  %v368_v28 = vpack.c.bf16 %v54_v23, %v52_v22  ;;  %v53_v31 = vld [vmem:[#allocation2 + $0x50] sm:$0xff]  ;;  %v115_v32 = vld [vmem:[#allocation2 + $0x240] sm:$0xff] }
  0x1a   :  { %v432_v29 = vpack.c.bf16 %v118_v25, %v116_v24  ;;  %v117_v33 = vld [vmem:[#allocation2 + $0x250] sm:$0xff]  ;;  %v56_v34 = vld [vmem:[#allocation2 + $0x68] sm:$0xff]  ;;  %v58_v35 = vld [vmem:[#allocation2 + $0x78] sm:$0xff]  ;;  %v370_v38 = vpack.c.bf16 %v53_v31, %v51_v30 }
  0x1b   :  { %v120_v36 = vld [vmem:[#allocation2 + $0x268] sm:$0xff]  ;;  %v122_v37 = vld [vmem:[#allocation2 + $0x278] sm:$0xff]  ;;  %v434_v39 = vpack.c.bf16 %v117_v33, %v115_v32  ;;  %v372_v40 = vpack.c.bf16 %v58_v35, %v56_v34  ;;  %v55_v42 = vld [vmem:[#allocation2 + $0x60] sm:$0xff] }
  0x1c   :  { %v436_v41 = vpack.c.bf16 %v122_v37, %v120_v36  ;;  %v57_v43 = vld [vmem:[#allocation2 + $0x70] sm:$0xff]  ;;  %v119_v44 = vld [vmem:[#allocation2 + $0x260] sm:$0xff]  ;;  %v60_v46 = vld [vmem:[#allocation2 + $0x88] sm:$0xff] }
  0x1d   :  { %v121_v45 = vld [vmem:[#allocation2 + $0x270] sm:$0xff]  ;;  %v62_v47 = vld [vmem:[#allocation2 + $0x98] sm:$0xff]  ;;  %v124_v48 = vld [vmem:[#allocation2 + $0x288] sm:$0xff]  ;;  %v374_v50 = vpack.c.bf16 %v57_v43, %v55_v42 }
  0x1e   :  { %v126_v49 = vld [vmem:[#allocation2 + $0x298] sm:$0xff]  ;;  %v438_v51 = vpack.c.bf16 %v121_v45, %v119_v44  ;;  %v376_v52 = vpack.c.bf16 %v62_v47, %v60_v46  ;;  %v59_v54 = vld [vmem:[#allocation2 + $0x80] sm:$0xff]  ;;  %v61_v55 = vld [vmem:[#allocation2 + $0x90] sm:$0xff] }
  0x1f   :  { %367 = vmatpush1.bf16.xpose.msra.mxu0 %v366_v26  ;;  %v440_v53 = vpack.c.bf16 %v126_v49, %v124_v48  ;;  %v123_v56 = vld [vmem:[#allocation2 + $0x280] sm:$0xff]  ;;  %v125_v57 = vld [vmem:[#allocation2 + $0x290] sm:$0xff]  ;;  %v64_v58 = vld [vmem:[#allocation2 + $0xa8] sm:$0xff]  ;;  %v378_v62 = vpack.c.bf16 %v61_v55, %v59_v54 }
  0x20   :  { %431 = vmatpush1.bf16.xpose.msra.mxu1 %v430_v27  ;;  %369 = vmatprep.subr.bf16.mxu0 %v368_v28  ;;  %v66_v59 = vld [vmem:[#allocation2 + $0xb8] sm:$0xff]  ;;  %v128_v60 = vld [vmem:[#allocation2 + $0x2a8] sm:$0xff]  ;;  %v442_v63 = vpack.c.bf16 %v125_v57, %v123_v56  ;;  %v63_v2 = vld [vmem:[#allocation2 + $0xa0] sm:$0xff] }
  0x21   :  { %433 = vmatprep.subr.bf16.mxu1 %v432_v29  ;;  %v130_v61 = vld [vmem:[#allocation2 + $0x2b8] sm:$0xff]  ;;  %v380_v0 = vpack.c.bf16 %v66_v59, %v64_v58  ;;  %v65_v3 = vld [vmem:[#allocation2 + $0xb0] sm:$0xff]  ;;  %v127_v4 = vld [vmem:[#allocation2 + $0x2a0] sm:$0xff] }
  0x22   :  { %v444_v1 = vpack.c.bf16 %v130_v61, %v128_v60  ;;  %v129_v5 = vld [vmem:[#allocation2 + $0x2b0] sm:$0xff]  ;;  %v68_v6 = vld [vmem:[#allocation2 + $0xc8] sm:$0xff]  ;;  %v70_v7 = vld [vmem:[#allocation2 + $0xd8] sm:$0xff]  ;;  %v382_v10 = vpack.c.bf16 %v65_v3, %v63_v2 }
  0x23   :  { %v132_v8 = vld [vmem:[#allocation2 + $0x2c8] sm:$0xff]  ;;  %v134_v9 = vld [vmem:[#allocation2 + $0x2d8] sm:$0xff]  ;;  %v446_v11 = vpack.c.bf16 %v129_v5, %v127_v4  ;;  %v384_v12 = vpack.c.bf16 %v70_v7, %v68_v6  ;;  %v67_v15 = vld [vmem:[#allocation2 + $0xc0] sm:$0xff] }
  0x24   :  { %v448_v13 = vpack.c.bf16 %v134_v9, %v132_v8  ;;  %v40_v14 = vld [vmem:[%s581_s0 + $0x8] sm:$0xff]  ;;  %v69_v16 = vld [vmem:[#allocation2 + $0xd0] sm:$0xff]  ;;  %v131_v17 = vld [vmem:[#allocation2 + $0x2c0] sm:$0xff] }
  0x25   :  { %235 = vmatprep.mubr.f32.mxu0 %v40_v14  ;;  %312 = vmatprep.mubr.f32.mxu1 %v40_v14  ;;  %v133_v18 = vld [vmem:[#allocation2 + $0x2d0] sm:$0xff]  ;;  %v72_v19 = vld [vmem:[#allocation2 + $0xe8] sm:$0xff]  ;;  %v74_v20 = vld [vmem:[#allocation2 + $0xf8] sm:$0xff]  ;;  %v386_v23 = vpack.c.bf16 %v69_v16, %v67_v15 }
  0x26   :  { %v136_v21 = vld [vmem:[#allocation2 + $0x2e8] sm:$0xff]  ;;  %v138_v22 = vld [vmem:[#allocation2 + $0x2f8] sm:$0xff]  ;;  %v450_v24 = vpack.c.bf16 %v133_v18, %v131_v17  ;;  %v388_v25 = vpack.c.bf16 %v74_v20, %v72_v19  ;;  %v71_v27 = vld [vmem:[#allocation2 + $0xe0] sm:$0xff] }
  0x27   :  { %371 = vmatpush1.bf16.xpose.msra.mxu0 %v370_v38  ;;  %v452_v26 = vpack.c.bf16 %v138_v22, %v136_v21  ;;  %v73_v28 = vld [vmem:[#allocation2 + $0xf0] sm:$0xff]  ;;  %v135_v29 = vld [vmem:[#allocation2 + $0x2e0] sm:$0xff]  ;;  %v76_v31 = vld [vmem:[#allocation2 + $0x108] sm:$0xff] }
  0x28   :  { %435 = vmatpush1.bf16.xpose.msra.mxu1 %v434_v39  ;;  %373 = vmatprep.subr.bf16.mxu0 %v372_v40  ;;  %v137_v30 = vld [vmem:[#allocation2 + $0x2f0] sm:$0xff]  ;;  %v78_v32 = vld [vmem:[#allocation2 + $0x118] sm:$0xff]  ;;  %v140_v33 = vld [vmem:[#allocation2 + $0x308] sm:$0xff]  ;;  %v390_v35 = vpack.c.bf16 %v73_v28, %v71_v27 }
  0x29   :  { %437 = vmatprep.subr.bf16.mxu1 %v436_v41  ;;  %v142_v34 = vld [vmem:[#allocation2 + $0x318] sm:$0xff]  ;;  %v454_v36 = vpack.c.bf16 %v137_v30, %v135_v29  ;;  %v392_v37 = vpack.c.bf16 %v78_v32, %v76_v31  ;;  %v75_v39 = vld [vmem:[#allocation2 + $0x100] sm:$0xff]  ;;  %v77_v40 = vld [vmem:[#allocation2 + $0x110] sm:$0xff] }
  0x2a   :  { %v456_v38 = vpack.c.bf16 %v142_v34, %v140_v33  ;;  %v139_v41 = vld [vmem:[#allocation2 + $0x300] sm:$0xff]  ;;  %v141_v42 = vld [vmem:[#allocation2 + $0x310] sm:$0xff]  ;;  %v80_v43 = vld [vmem:[#allocation2 + $0x128] sm:$0xff]  ;;  %v394_v47 = vpack.c.bf16 %v77_v40, %v75_v39 }
  0x2b   :  { %v82_v44 = vld [vmem:[#allocation2 + $0x138] sm:$0xff]  ;;  %v144_v45 = vld [vmem:[#allocation2 + $0x328] sm:$0xff]  ;;  %v458_v48 = vpack.c.bf16 %v141_v42, %v139_v41  ;;  %v145_v54 = vld [vmem:[#allocation2 + $0x330] sm:$0xff] }
  0x2c   :  { %v146_v46 = vld [vmem:[#allocation2 + $0x338] sm:$0xff]  ;;  %v396_v49 = vpack.c.bf16 %v82_v44, %v80_v43  ;;  %v84_v55 = vld [vmem:[#allocation2 + $0x148] sm:$0xff]  ;;  %v149_v2 = vld [vmem:[#allocation2 + $0x350] sm:$0xff] }
  0x2d   :  { %v86_v56 = vld [vmem:[#allocation2 + $0x158] sm:$0xff]  ;;  %v148_v57 = vld [vmem:[#allocation2 + $0x348] sm:$0xff]  ;;  %v153_v14 = vld [vmem:[#allocation2 + $0x370] sm:$0xff] }
  0x2e   :  { %v150_v58 = vld [vmem:[#allocation2 + $0x358] sm:$0xff]  ;;  %v400_v61 = vpack.c.bf16 %v86_v56, %v84_v55  ;;  %v88_v3 = vld [vmem:[#allocation2 + $0x168] sm:$0xff] }
  0x2f   :  { %375 = vmatpush1.bf16.xpose.msra.mxu0 %v374_v50  ;;  %v460_v50 = vpack.c.bf16 %v146_v46, %v144_v45  ;;  %v90_v4 = vld [vmem:[#allocation2 + $0x178] sm:$0xff]  ;;  %v152_v5 = vld [vmem:[#allocation2 + $0x368] sm:$0xff] }
  0x30   :  { %439 = vmatpush1.bf16.xpose.msra.mxu1 %v438_v51  ;;  %377 = vmatprep.subr.bf16.mxu0 %v376_v52  ;;  %v79_v51 = vld [vmem:[#allocation2 + $0x120] sm:$0xff]  ;;  %v81_v52 = vld [vmem:[#allocation2 + $0x130] sm:$0xff]  ;;  %v154_v6 = vld [vmem:[#allocation2 + $0x378] sm:$0xff]  ;;  %v404_v9 = vpack.c.bf16 %v90_v4, %v88_v3 }
  0x31   :  { %441 = vmatprep.subr.bf16.mxu1 %v440_v53  ;;  %v143_v53 = vld [vmem:[#allocation2 + $0x320] sm:$0xff]  ;;  %v398_v59 = vpack.c.bf16 %v81_v52, %v79_v51  ;;  %v92_v15 = vld [vmem:[#allocation2 + $0x188] sm:$0xff]  ;;  %v94_v16 = vld [vmem:[#allocation2 + $0x198] sm:$0xff] }
  0x32   :  { %v462_v60 = vpack.c.bf16 %v145_v54, %v143_v53  ;;  %v156_v17 = vld [vmem:[#allocation2 + $0x388] sm:$0xff]  ;;  %v158_v18 = vld [vmem:[#allocation2 + $0x398] sm:$0xff]  ;;  %v408_v21 = vpack.c.bf16 %v94_v16, %v92_v15  ;;  %v41_v3 = vld [vmem:[%s581_s0 + $0x10] sm:$0xff] }
  0x33   :  { %v472_v22 = vpack.c.bf16 %v158_v18, %v156_v17  ;;  %v96_v27 = vld [vmem:[#allocation2 + $0x1a8] sm:$0xff]  ;;  %v98_v28 = vld [vmem:[#allocation2 + $0x1b8] sm:$0xff] }
  0x34   :  { %v160_v29 = vld [vmem:[#allocation2 + $0x3a8] sm:$0xff]  ;;  %v162_v30 = vld [vmem:[#allocation2 + $0x3b8] sm:$0xff]  ;;  %v412_v33 = vpack.c.bf16 %v98_v28, %v96_v27 }
  0x35   :  { %v476_v34 = vpack.c.bf16 %v162_v30, %v160_v29  ;;  %v100_v39 = vld [vmem:[#allocation2 + $0x1c8] sm:$0xff]  ;;  %v102_v40 = vld [vmem:[#allocation2 + $0x1d8] sm:$0xff] }
  0x36   :  { %v164_v41 = vld [vmem:[#allocation2 + $0x3c8] sm:$0xff]  ;;  %v166_v42 = vld [vmem:[#allocation2 + $0x3d8] sm:$0xff]  ;;  %v416_v45 = vpack.c.bf16 %v102_v40, %v100_v39 }
  0x37   :  { %379 = vmatpush1.bf16.xpose.msra.mxu0 %v378_v62  ;;  %v464_v62 = vpack.c.bf16 %v150_v58, %v148_v57  ;;  %v480_v46 = vpack.c.bf16 %v166_v42, %v164_v41  ;;  %v104_v51 = vld [vmem:[#allocation2 + $0x1e8] sm:$0xff]  ;;  %v106_v52 = vld [vmem:[#allocation2 + $0x1f8] sm:$0xff] }
  0x38   :  { %443 = vmatpush1.bf16.xpose.msra.mxu1 %v442_v63  ;;  %381 = vmatprep.subr.bf16.mxu0 %v380_v0  ;;  %v83_v63 = vld [vmem:[#allocation2 + $0x140] sm:$0xff]  ;;  %v85_v0 = vld [vmem:[#allocation2 + $0x150] sm:$0xff]  ;;  %v168_v53 = vld [vmem:[#allocation2 + $0x3e8] sm:$0xff]  ;;  %v420_v57 = vpack.c.bf16 %v106_v52, %v104_v51 }
  0x39   :  { %445 = vmatprep.subr.bf16.mxu1 %v444_v1  ;;  %v147_v1 = vld [vmem:[#allocation2 + $0x340] sm:$0xff]  ;;  %v402_v7 = vpack.c.bf16 %v85_v0, %v83_v63  ;;  %v170_v54 = vld [vmem:[#allocation2 + $0x3f8] sm:$0xff] }
  0x3a   :  { %v466_v8 = vpack.c.bf16 %v149_v2, %v147_v1  ;;  %v484_v58 = vpack.c.bf16 %v170_v54, %v168_v53  ;;  %v39_v1 = vld [vmem:[%s581_s0] sm:$0xff]  ;;  %v42_v2 = vld [vmem:[%s581_s0 + $0x18] sm:$0xff] }
  0x3f   :  { %383 = vmatpush1.bf16.xpose.msra.mxu0 %v382_v10  ;;  %v468_v10 = vpack.c.bf16 %v154_v6, %v152_v5 }
  0x40   :  { %447 = vmatpush1.bf16.xpose.msra.mxu1 %v446_v11  ;;  %385 = vmatprep.subr.bf16.mxu0 %v384_v12  ;;  %v87_v11 = vld [vmem:[#allocation2 + $0x160] sm:$0xff]  ;;  %v89_v12 = vld [vmem:[#allocation2 + $0x170] sm:$0xff] }
  0x41   :  { %449 = vmatprep.subr.bf16.mxu1 %v448_v13  ;;  %v151_v13 = vld [vmem:[#allocation2 + $0x360] sm:$0xff]  ;;  %v406_v19 = vpack.c.bf16 %v89_v12, %v87_v11 }
  0x42   :  { %v470_v20 = vpack.c.bf16 %v153_v14, %v151_v13 }
  0x47   :  { %387 = vmatpush1.bf16.xpose.msra.mxu0 %v386_v23  ;;  %v91_v23 = vld [vmem:[#allocation2 + $0x180] sm:$0xff] }
  0x48   :  { %451 = vmatpush1.bf16.xpose.msra.mxu1 %v450_v24  ;;  %389 = vmatprep.subr.bf16.mxu0 %v388_v25  ;;  %v93_v24 = vld [vmem:[#allocation2 + $0x190] sm:$0xff]  ;;  %v155_v25 = vld [vmem:[#allocation2 + $0x380] sm:$0xff] }
  0x49   :  { %453 = vmatprep.subr.bf16.mxu1 %v452_v26  ;;  %v157_v26 = vld [vmem:[#allocation2 + $0x390] sm:$0xff]  ;;  %v410_v31 = vpack.c.bf16 %v93_v24, %v91_v23 }
  0x4a   :  { %v474_v32 = vpack.c.bf16 %v157_v26, %v155_v25 }
  0x4f   :  { %391 = vmatpush1.bf16.xpose.msra.mxu0 %v390_v35  ;;  %v95_v35 = vld [vmem:[#allocation2 + $0x1a0] sm:$0xff] }
  0x50   :  { %455 = vmatpush1.bf16.xpose.msra.mxu1 %v454_v36  ;;  %393 = vmatprep.subr.bf16.mxu0 %v392_v37  ;;  %v97_v36 = vld [vmem:[#allocation2 + $0x1b0] sm:$0xff]  ;;  %v159_v37 = vld [vmem:[#allocation2 + $0x3a0] sm:$0xff] }
  0x51   :  { %457 = vmatprep.subr.bf16.mxu1 %v456_v38  ;;  %v161_v38 = vld [vmem:[#allocation2 + $0x3b0] sm:$0xff]  ;;  %v414_v43 = vpack.c.bf16 %v97_v36, %v95_v35 }
  0x52   :  { %v478_v44 = vpack.c.bf16 %v161_v38, %v159_v37 }
  0x57   :  { %395 = vmatpush1.bf16.xpose.msra.mxu0 %v394_v47  ;;  %v99_v47 = vld [vmem:[#allocation2 + $0x1c0] sm:$0xff] }
  0x58   :  { %459 = vmatpush1.bf16.xpose.msra.mxu1 %v458_v48  ;;  %397 = vmatprep.subr.bf16.mxu0 %v396_v49  ;;  %v101_v48 = vld [vmem:[#allocation2 + $0x1d0] sm:$0xff]  ;;  %v163_v49 = vld [vmem:[#allocation2 + $0x3c0] sm:$0xff] }
  0x59   :  { %461 = vmatprep.subr.bf16.mxu1 %v460_v50  ;;  %v165_v50 = vld [vmem:[#allocation2 + $0x3d0] sm:$0xff]  ;;  %v418_v55 = vpack.c.bf16 %v101_v48, %v99_v47 }
  0x5a   :  { %v482_v56 = vpack.c.bf16 %v165_v50, %v163_v49 }
  0x5f   :  { %399 = vmatpush1.bf16.xpose.msra.mxu0 %v398_v59  ;;  %v103_v59 = vld [vmem:[#allocation2 + $0x1e0] sm:$0xff] }
  0x60   :  { %463 = vmatpush1.bf16.xpose.msra.mxu1 %v462_v60  ;;  %401 = vmatprep.subr.bf16.mxu0 %v400_v61  ;;  %v105_v60 = vld [vmem:[#allocation2 + $0x1f0] sm:$0xff]  ;;  %v167_v61 = vld [vmem:[#allocation2 + $0x3e0] sm:$0xff] }
  0x61   :  { %465 = vmatprep.subr.bf16.mxu1 %v464_v62  ;;  %v169_v62 = vld [vmem:[#allocation2 + $0x3f0] sm:$0xff]  ;;  %v422_v63 = vpack.c.bf16 %v105_v60, %v103_v59 }
  0x62   :  { %v486_v0 = vpack.c.bf16 %v169_v62, %v167_v61 }
  0x67   :  { %403 = vmatpush1.bf16.xpose.msra.mxu0 %v402_v7 }
  0x68   :  { %467 = vmatpush1.bf16.xpose.msra.mxu1 %v466_v8  ;;  %405 = vmatprep.subr.bf16.mxu0 %v404_v9 }
  0x69   :  { %469 = vmatprep.subr.bf16.mxu1 %v468_v10 }
  0x6f   :  { %407 = vmatpush1.bf16.xpose.msra.mxu0 %v406_v19 }
  0x70   :  { %471 = vmatpush1.bf16.xpose.msra.mxu1 %v470_v20  ;;  %409 = vmatprep.subr.bf16.mxu0 %v408_v21 }
  0x71   :  { %473 = vmatprep.subr.bf16.mxu1 %v472_v22 }
  0x77   :  { %411 = vmatpush1.bf16.xpose.msra.mxu0 %v410_v31 }
  0x78   :  { %475 = vmatpush1.bf16.xpose.msra.mxu1 %v474_v32  ;;  %413 = vmatprep.subr.bf16.mxu0 %v412_v33 }
  0x79   :  { %477 = vmatprep.subr.bf16.mxu1 %v476_v34 }
  0x7f   :  { %415 = vmatpush1.bf16.xpose.msra.mxu0 %v414_v43 }
  0x80   :  { %479 = vmatpush1.bf16.xpose.msra.mxu1 %v478_v44  ;;  %417 = vmatprep.subr.bf16.mxu0 %v416_v45 }
  0x81   :  { %481 = vmatprep.subr.bf16.mxu1 %v480_v46 }
  0x87   :  { %419 = vmatpush1.bf16.xpose.msra.mxu0 %v418_v55 }
  0x88   :  { %483 = vmatpush1.bf16.xpose.msra.mxu1 %v482_v56  ;;  %421 = vmatprep.subr.bf16.mxu0 %v420_v57 }
  0x89   :  { %485 = vmatprep.subr.bf16.mxu1 %v484_v58 }
  0x8f   :  { %423 = vmatpush1.bf16.xpose.msra.mxu0 %v422_v63 }
  0x90   :  { %487 = vmatpush1.bf16.xpose.msra.mxu1 %v486_v0 }
  0x96   :  { %236 = vmatmul.mubr.f32.vlgmr.msra.gmra.mrb[0].mxu0 %v39_v1 }
  0x97   :  { %313 = vmatmul.mubr.f32.vlgmr.msra.gmra.mrb[0].mxu1 %v39_v1  ;;  %241 = vmatprep.mubr.f32.mxu0 %v42_v2 }
  0x98   :  { %318 = vmatprep.mubr.f32.mxu1 %v42_v2 }
  0x9a   :  { %242 = vmatmul.mubr.f32.gmra.mrb[2].mxu0 %v41_v3 }
  0x9b   :  { %319 = vmatmul.mubr.f32.gmra.mrb[2].mxu1 %v41_v3 }
 0x169   :  { %v237_v4 = vpop.f32.mrb[0].mxu0 }
 0x16a   :  { %325 = vst [vmem:[%s583_s2] sm:$0xff] %v237_v4  ;;  %v314_v5 = vpop.f32.mrb[0].mxu1  ;;  %v239_v6 = vpop.f32.mrb[1].mxu0 }
 0x16b   :  { %327 = vst [vmem:[%s583_s2 + $0x10] sm:$0xff] %v314_v5  ;;  %326 = vst [vmem:[%s583_s2 + $0x8] sm:$0xff] %v239_v6  ;;  %v316_v7 = vpop.f32.mrb[1].mxu1 }
 0x16c   :  { %328 = vst [vmem:[%s583_s2 + $0x18] sm:$0xff] %v316_v7 }
 0x16d   :  { %v243_v8 = vpop.f32.mrb[2].mxu0 }
 0x16e   :  { %329 = vst [vmem:[%s583_s2 + $0x20] sm:$0xff] %v243_v8  ;;  %v320_v9 = vpop.f32.mrb[2].mxu1  ;;  %v245_v10 = vpop.f32.mrb[3].mxu0 }
 0x16f   :  { %331 = vst [vmem:[%s583_s2 + $0x30] sm:$0xff] %v320_v9  ;;  %330 = vst [vmem:[%s583_s2 + $0x28] sm:$0xff] %v245_v10  ;;  %v322_v11 = vpop.f32.mrb[3].mxu1 }
 0x170   :  { %332 = vst [vmem:[%s583_s2 + $0x38] sm:$0xff] %v322_v11 }
 0x171   :  { %351 = vsyncpa [#allocation3], 1 }

</bundles_post_ra>
